<compile_context>
chip_gen: v7x
topology: tpu7x:2x2x1
jax: 0.10.0
libtpu: 0.0.40
codegen_flags: <defaults>
</compile_context>

<pallas_src>
import functools

import jax
import jax.numpy as jnp
from jax.experimental import pallas as pl
from jax.experimental.pallas import tpu as pltpu

LANE = 128
MOMENTUM = 0.9
EPS = 1e-8


def _frank_wolfe_kernel(num_tasks,
                        gamma_ref, init_ref,
                        losses_ref, weights_ref, ema_ref,
                        wloss_ref, new_w_ref, new_ema_ref):
    losses = losses_ref[...]       # (1, Tp) f32, zero-padded past num_tasks
    w = weights_ref[...]           # (1, Tp)
    ema_prev = ema_ref[...]        # (1, Tp)

    lane = jax.lax.broadcasted_iota(jnp.int32, losses.shape, 1)
    valid = lane < num_tasks

    # --- update_ema ------------------------------------------------------
    init_f = init_ref[0]           # 1.0 if EMA already initialized, else 0.0
    ema_upd = MOMENTUM * ema_prev + (1.0 - MOMENTUM) * losses
    ema_new = init_f * ema_upd + (1.0 - init_f) * losses
    ema_new = jnp.where(valid, ema_new, 0.0)
    new_ema_ref[...] = ema_new

    # --- compute_frank_wolfe_step: one-hot of argmin(losses/(ema+eps)) ----
    grads = losses / (ema_new + EPS)
    grads = jnp.where(valid, grads, jnp.inf)                 # mask padding
    gmin = jnp.min(grads, axis=-1, keepdims=True)            # (1, 1)
    cand = jnp.where(grads == gmin, lane, num_tasks)
    min_idx = jnp.min(cand, axis=-1, keepdims=True)          # first min index
    s = (lane == min_idx).astype(jnp.float32)

    # --- Frank-Wolfe weight update ----------------------------------------
    gamma = gamma_ref[0]                                      # 2/(iter+2)
    new_w = (1.0 - gamma) * w + gamma * s
    new_w = jnp.where(valid, new_w, 0.0)
    new_w_ref[...] = new_w

    # --- weighted loss with the UPDATED weights (matches weights.copy_) ----
    wloss_ref[...] = jnp.sum(new_w * losses, axis=-1, keepdims=True)


def adaptive_frank_wolfe_step(losses, weights, ema, ema_initialized, iteration,
                              total_iterations=None):
    """Functional forward of AdaptiveFrankWolfeLoss.

    losses, weights, ema: (num_tasks,) float32
    ema_initialized: 0/1 (ema is ignored when 0)
    iteration: int (total_iterations is unused, kept for signature parity)
    Returns (weighted_loss scalar, new_weights (num_tasks,), new_ema (num_tasks,)).
    """
    del total_iterations  # unused in the PyTorch forward as well
    num_tasks = losses.shape[-1]
    tp = max(LANE, ((num_tasks + LANE - 1) // LANE) * LANE)   # lane-dense pad

    def pad(x):
        x = jnp.asarray(x, jnp.float32).reshape(1, num_tasks)
        return jnp.pad(x, ((0, 0), (0, tp - num_tasks)))

    losses_p, weights_p, ema_p = pad(losses), pad(weights), pad(ema)
    gamma = 2.0 / (jnp.asarray(iteration, jnp.float32) + 2.0)
    gamma_arr = gamma.reshape(1)
    init_arr = jnp.asarray(ema_initialized, jnp.float32).reshape(1)

    smem = pl.BlockSpec(memory_space=pltpu.MemorySpace.SMEM)
    vmem = pl.BlockSpec(memory_space=pltpu.MemorySpace.VMEM)

    wloss, new_w, new_ema = pl.pallas_call(
        functools.partial(_frank_wolfe_kernel, num_tasks),
        out_shape=(jax.ShapeDtypeStruct((1, 1), jnp.float32),
                   jax.ShapeDtypeStruct((1, tp), jnp.float32),
                   jax.ShapeDtypeStruct((1, tp), jnp.float32)),
        in_specs=[smem, smem, vmem, vmem, vmem],
        out_specs=(vmem, vmem, vmem),
        cost_estimate=pl.CostEstimate(
            flops=12 * tp, transcendentals=0,
            bytes_accessed=(3 * tp + 2 * tp + 1 + 2) * 4),
    )(gamma_arr, init_arr, losses_p, weights_p, ema_p)

    return wloss[0, 0], new_w[0, :num_tasks], new_ema[0, :num_tasks]


def reference_forward(losses, weights, ema, ema_initialized, iteration):
    """Plain-JAX reference matching the PyTorch forward (functional state)."""
    losses = jnp.asarray(losses, jnp.float32)
    new_ema = MOMENTUM * ema + (1.0 - MOMENTUM) * losses if ema_initialized else losses
    grads = losses / (new_ema + EPS)
    min_idx = jnp.argmin(grads)
    s = jnp.zeros_like(weights).at[min_idx].set(1.0)
    gamma = 2.0 / (iteration + 2.0)
    new_w = (1.0 - gamma) * weights + gamma * s
    weighted_loss = jnp.sum(new_w * losses)
    return weighted_loss, new_w, new_ema


if __name__ == "__main__":
    num_tasks = 2
    key = jax.random.PRNGKey(0)
    k1, k2 = jax.random.split(key)

    # Module state: weights = ones/num_tasks, ema not yet initialized.
    weights = jnp.ones((num_tasks,), jnp.float32) / num_tasks
    ema = jnp.zeros((num_tasks,), jnp.float32)
    ema_initialized = 0

    losses_seq = [
        jax.random.uniform(k1, (num_tasks,), jnp.float32, 0.1, 2.0),
        jax.random.uniform(k2, (num_tasks,), jnp.float32, 0.1, 2.0),
    ]

    ref_w, ref_ema = weights, ema
    ok = True
    for it, losses in enumerate(losses_seq):
        wl, weights, ema = adaptive_frank_wolfe_step(
            losses, weights, ema, ema_initialized, it, total_iterations=100)
        wl, weights, ema = jax.block_until_ready((wl, weights, ema))

        ref_wl, ref_w, ref_ema = reference_forward(
            losses, ref_w, ref_ema, ema_initialized, it)

        ok &= bool(jnp.allclose(wl, ref_wl, atol=1e-6, rtol=1e-6))
        ok &= bool(jnp.allclose(weights, ref_w, atol=1e-6, rtol=1e-6))
        ok &= bool(jnp.allclose(ema, ref_ema, atol=1e-6, rtol=1e-6))
        ema_initialized = 1

    assert ok, "mismatch vs reference"
    print("KERNEL_OK")
</pallas_src>

<mosaic_0001>
module attributes {stable_mosaic.version = 11 : i64} {
  func.func @_frank_wolfe_kernel(%arg0: memref<1xf32, #tpu.memory_space<smem>>, %arg1: memref<1xf32, #tpu.memory_space<smem>>, %arg2: memref<1x128xf32, #tpu.memory_space<vmem>>, %arg3: memref<1x128xf32, #tpu.memory_space<vmem>>, %arg4: memref<1x128xf32, #tpu.memory_space<vmem>>, %arg5: memref<1x1xf32, #tpu.memory_space<vmem>>, %arg6: memref<1x128xf32, #tpu.memory_space<vmem>>, %arg7: memref<1x128xf32, #tpu.memory_space<vmem>>) attributes {dimension_semantics = [], scalar_prefetch = 0 : i64, scratch_operands = 0 : i64, tpu.core_type = #tpu.core_type<tc>} {
    %c0 = arith.constant 0 : index
    %c0_0 = arith.constant 0 : index
    %0 = vector.load %arg2[%c0, %c0_0] : memref<1x128xf32, #tpu.memory_space<vmem>>, vector<1x128xf32>
    %c0_1 = arith.constant 0 : index
    %c0_2 = arith.constant 0 : index
    %1 = vector.load %arg3[%c0_1, %c0_2] : memref<1x128xf32, #tpu.memory_space<vmem>>, vector<1x128xf32>
    %c0_3 = arith.constant 0 : index
    %c0_4 = arith.constant 0 : index
    %2 = vector.load %arg4[%c0_3, %c0_4] : memref<1x128xf32, #tpu.memory_space<vmem>>, vector<1x128xf32>
    %3 = tpu.iota {dimensions = array<i32: 1>} : vector<1x128xi32>
    %c2_i32 = arith.constant 2 : i32
    %4 = vector.broadcast %c2_i32 : i32 to vector<1x128xi32>
    %5 = arith.cmpi slt, %3, %4 : vector<1x128xi32>
    %c0_5 = arith.constant 0 : index
    %6 = memref.load %arg1[%c0_5] : memref<1xf32, #tpu.memory_space<smem>>
    %cst = arith.constant 0.899999976 : f32
    %7 = vector.broadcast %cst : f32 to vector<1x128xf32>
    %8 = arith.mulf %7, %2 : vector<1x128xf32>
    %cst_6 = arith.constant 1.000000e-01 : f32
    %9 = vector.broadcast %cst_6 : f32 to vector<1x128xf32>
    %10 = arith.mulf %9, %0 : vector<1x128xf32>
    %11 = arith.addf %8, %10 : vector<1x128xf32>
    %12 = vector.broadcast %6 : f32 to vector<1x128xf32>
    %13 = arith.mulf %12, %11 : vector<1x128xf32>
    %cst_7 = arith.constant 1.000000e+00 : f32
    %14 = arith.subf %cst_7, %6 : f32
    %15 = vector.broadcast %14 : f32 to vector<1x128xf32>
    %16 = arith.mulf %15, %0 : vector<1x128xf32>
    %17 = arith.addf %13, %16 : vector<1x128xf32>
    %cst_8 = arith.constant 0.000000e+00 : f32
    %18 = vector.broadcast %cst_8 : f32 to vector<1x128xf32>
    %19 = arith.select %5, %17, %18 : vector<1x128xi1>, vector<1x128xf32>
    %c0_9 = arith.constant 0 : index
    %c0_10 = arith.constant 0 : index
    %20 = vector.load %arg7[%c0_9, %c0_10] : memref<1x128xf32, #tpu.memory_space<vmem>>, vector<1x128xf32>
    tpu.vector_store %arg7[%c0_9, %c0_10], %19 {strides = array<i32>} : memref<1x128xf32, #tpu.memory_space<vmem>>, vector<1x128xf32>,
    %cst_11 = arith.constant 9.99999993E-9 : f32
    %21 = vector.broadcast %cst_11 : f32 to vector<1x128xf32>
    %22 = arith.addf %19, %21 : vector<1x128xf32>
    %23 = arith.divf %0, %22 : vector<1x128xf32>
    %cst_12 = arith.constant 0x7F800000 : f32
    %24 = vector.broadcast %cst_12 : f32 to vector<1x128xf32>
    %25 = arith.select %5, %23, %24 : vector<1x128xi1>, vector<1x128xf32>
    %cst_13 = arith.constant dense<0x7F800000> : vector<1xf32>
    %26 = vector.multi_reduction <minimumf>, %25, %cst_13 [1] : vector<1x128xf32> to vector<1xf32>
    %27 = vector.shape_cast %26 : vector<1xf32> to vector<1x1xf32>
    %28 = vector.broadcast %27 : vector<1x1xf32> to vector<1x128xf32>
    %29 = arith.cmpf oeq, %25, %28 : vector<1x128xf32>
    %c2_i32_14 = arith.constant 2 : i32
    %30 = vector.broadcast %c2_i32_14 : i32 to vector<1x128xi32>
    %31 = arith.select %29, %3, %30 : vector<1x128xi1>, vector<1x128xi32>
    %cst_15 = arith.constant dense<2147483647> : vector<1xi32>
    %32 = vector.multi_reduction <minsi>, %31, %cst_15 [1] : vector<1x128xi32> to vector<1xi32>
    %33 = vector.shape_cast %32 : vector<1xi32> to vector<1x1xi32>
    %34 = vector.broadcast %33 : vector<1x1xi32> to vector<1x128xi32>
    %35 = arith.cmpi eq, %3, %34 : vector<1x128xi32>
    %36 = arith.extui %35 : vector<1x128xi1> to vector<1x128xi32>
    %37 = arith.sitofp %36 : vector<1x128xi32> to vector<1x128xf32>
    %c0_16 = arith.constant 0 : index
    %38 = memref.load %arg0[%c0_16] : memref<1xf32, #tpu.memory_space<smem>>
    %cst_17 = arith.constant 1.000000e+00 : f32
    %39 = arith.subf %cst_17, %38 : f32
    %40 = vector.broadcast %39 : f32 to vector<1x128xf32>
    %41 = arith.mulf %40, %1 : vector<1x128xf32>
    %42 = vector.broadcast %38 : f32 to vector<1x128xf32>
    %43 = arith.mulf %42, %37 : vector<1x128xf32>
    %44 = arith.addf %41, %43 : vector<1x128xf32>
    %cst_18 = arith.constant 0.000000e+00 : f32
    %45 = vector.broadcast %cst_18 : f32 to vector<1x128xf32>
    %46 = arith.select %5, %44, %45 : vector<1x128xi1>, vector<1x128xf32>
    %c0_19 = arith.constant 0 : index
    %c0_20 = arith.constant 0 : index
    %47 = vector.load %arg6[%c0_19, %c0_20] : memref<1x128xf32, #tpu.memory_space<vmem>>, vector<1x128xf32>
    tpu.vector_store %arg6[%c0_19, %c0_20], %46 {strides = array<i32>} : memref<1x128xf32, #tpu.memory_space<vmem>>, vector<1x128xf32>,
    %48 = arith.mulf %46, %0 : vector<1x128xf32>
    %cst_21 = arith.constant dense<0.000000e+00> : vector<1xf32>
    %49 = vector.multi_reduction <add>, %48, %cst_21 [1] : vector<1x128xf32> to vector<1xf32>
    %50 = vector.shape_cast %49 : vector<1xf32> to vector<1x1xf32>
    %c0_22 = arith.constant 0 : index
    %c0_23 = arith.constant 0 : index
    %51 = vector.load %arg5[%c0_22, %c0_23] : memref<1x1xf32, #tpu.memory_space<vmem>>, vector<1x1xf32>
    tpu.vector_store %arg5[%c0_22, %c0_23], %50 {strides = array<i32>} : memref<1x1xf32, #tpu.memory_space<vmem>>, vector<1x1xf32>,
    return
  }
}

</mosaic_0001>

<bundles_post_ra>
// kernel: tpu_custom_call.1
= control target key start
LH: loop header
LB: loop body
LE: loop exit
PB: predicated region body
PF: predicated region fallthrough
CT: control target
= control target key end

     0   :  { %15 = vsyncpa [#allocation5], 0  ;;  %v30_v2 = vlaneseq  ;;  %s313_s0 = inlined_call_operand.<no memory space> [shape: f32[1], index: 0, kind: input, shape index: {}]   ;;  %s314_s1 = inlined_call_operand.<no memory space> [shape: f32[1], index: 1, kind: input, shape index: {}]   ;;  %s315_s2 = inlined_call_operand.vmem [shape: f32[1,128], index: 2, kind: input, shape index: {}]   ;;  %s316_s3 = inlined_call_operand.vmem [shape: f32[1,128], index: 3, kind: input, shape index: {}]   ;;  %s317_s4 = inlined_call_operand.vmem [shape: f32[1,128], index: 4, kind: input, shape index: {}]   ;;  %s318_s5 = inlined_call_operand.hbm [shape: f32[1,1], index: 5, kind: output, shape index: {0}]   ;;  %s319_s6 = inlined_call_operand.hbm [shape: f32[1,128], index: 6, kind: output, shape index: {1}]   ;;  %s320_s7 = inlined_call_operand.hbm [shape: f32[1,128], index: 7, kind: output, shape index: {2}]  }
   0x1   :  { %v27_v0 = vld [vmem:[%s315_s2] sm:$0x1]  ;;  %s39_s30 = ssub.f32 1.0, %s314_s1 }
   0x2   :  { %v29_v1 = vld [vmem:[%s317_s4] sm:$0x1]  ;;  %v35_v4 = vmul.f32 0.1, %v27_v0 }
   0x3   :  { %v34_v3 = vmul.f32 0.9, %v29_v1 }
   0x4   :  { %16 = vsyncpa [#allocation7], 0  ;;  %v31_v5 = vand.u32 127, %v30_v2  ;;  %v37_v6 = vstv %s314_s1  ;;  %v40_v7 = vstv %s39_s30  ;;  %vm49_vm1 = vcmask 1040384   ;;  %s74_s4 = ssub.f32 1.0, %s313_s0 }
   0x5   :  { %v36_v8 = vadd.f32 %v35_v4, %v34_v3  ;;  %v41_v9 = vmul.f32 %v40_v7, %v27_v0  ;;  %v28_v31 = vld [vmem:[%s316_s3] sm:$0x1]  ;;  %v77_v34 = vstv %s313_s0  ;;  %v206_v36 = vmov 0.0   ;;  %s207_s3 = smov [#allocation6]  }
   0x6   :  { %vm32_vm0 = vcmp.lt.s32.totalorder %v31_v5, 2  ;;  %v75_v32 = vstv %s74_s4  ;;  %s104_s14 = sshll.u32 %s207_s3, 4  ;;  %s105_s14 = int_to_ptr.vmem [resolvable:$true] %s104_s14 }
   0x7   :  { %v38_v10 = vmul.f32 %v37_v6, %v36_v8  ;;  %v76_v35 = vmul.f32 %v75_v32, %v28_v31  ;;  %s136_s15 = scalar_lea.vmem %s105_s14, 16  ;;  %s140_s16 = scalar_lea.vmem %s105_s14, 32 }
   0x8   :  { %p137_p0 = scmp.ne.s32.totalorder %s105_s14, %s136_s15  ;;  %p141_p1 = scmp.lt.s32.totalorder %s105_s14, %s105_s14 }
   0x9   :  { %v42_v11 = vadd.f32 %v41_v9, %v38_v10  ;;  %p142_p2 = scmp.lt.s32.totalorder %s140_s16, %s136_s15 }
   0xb   :  { %v43_v12 = vsel %vm32_vm0, %v42_v11, 0.0  ;;  %p143_p3 = por %p142_p2, %p141_p1 }
   0xc   :  { %v45_v13 = vadd.f32 1e-08, %v43_v12  ;;  %44 = vst [vmem:[#allocation8] sm:$0x1] %v43_v12 }
   0xd   :  { %p144_p4 = pnand %p143_p3, %p137_p0 }
   0xe   :  { %134 = vrcp.f32 %v45_v13 }
  0x18   :  { %v135_v14 = vpop.eup %134 }
  0x19   :  { %v47_v15 = vmul.f32 %v135_v14, %v27_v0 }
  0x1b   :  { %v48_v16 = vsel %vm32_vm0, %v47_v15, inf }
  0x1c   :  { %v50_v17 = vsel %vm49_vm1, %v48_v16, inf }
  0x1d   :  { %51 = vmin.xlane.f32.xlu0 %v50_v17 }
  0xaa   :  { %v52_v18 = vpop.xlane.xlu0 %51 }
  0xab   :  { %vm53_vm2 = vcmp.eq.f32.partialorder %v48_v16, %v52_v18 }
  0xac   :  { %v54_v19 = vsel %vm53_vm2, %v31_v5, 2 }
  0xad   :  { %v55_v20 = vsel %vm49_vm1, %v54_v19, 2147483647 }
  0xae   :  { %v57_v21 = vshra.s32 %v55_v20, 16  ;;  %v56_v23 = vand.u32 65535, %v55_v20 }
  0xb0   :  { %v59_v22 = vcvt.s32.f32 %v57_v21  ;;  %v58_v25 = vcvt.s32.f32 %v56_v23 }
  0xb2   :  { %60 = vmin.xlane.f32.xlu0 %v59_v22 }
 0x13f   :  { %v61_v24 = vpop.xlane.xlu0 %60 }
 0x140   :  { %vm62_vm3 = vcmp.eq.f32.partialorder %v59_v22, %v61_v24  ;;  %v67_v27 = vcvt.f32.s32 %v61_v24 }
 0x141   :  { %v63_v26 = vsel %vm62_vm3, %v58_v25, inf }
 0x142   :  { %64 = vmin.xlane.f32.xlu1 %v63_v26  ;;  %v68_v29 = vshll.u32 %v67_v27, 16 }
 0x1cf   :  { %v65_v28 = vpop.xlane.xlu1 %64 }
 0x1d0   :  { %v66_v30 = vcvt.f32.s32 %v65_v28 }
 0x1d2   :  { %v69_v33 = vadd.s32 %v68_v29, %v66_v30 }
 0x1d4   :  { %vm70_vm4 = vcmp.eq.s32.totalorder %v31_v5, %v69_v33 }
 0x1d5   :  { %v129_v37 = vsel %vm70_vm4, 1.0, %v206_v36 }
 0x1d6   :  { %v78_v38 = vmul.f32 %v129_v37, %v77_v34 }
 0x1d8   :  { %v79_v39 = vadd.f32 %v78_v38, %v76_v35 }
 0x1da   :  { %v80_v40 = vsel %vm32_vm0, %v79_v39, 0.0 }
 0x1db   :  { %v82_v41 = vmul.f32 %v80_v40, %v27_v0  ;;  %81 = vst [vmem:[#allocation6] sm:$0x1] %v80_v40 }
 0x1dd   :  { %v83_v42 = vsel %vm49_vm1, %v82_v41, 0.0 }
 0x1de   :  { %84 = vadd.xlane.f32.xlu1 %v83_v42 }
 0x1df   :  { %147 = shalt.err (!%p144_p4)
}
 0x1e0   :  { %s148_s18 = scalar_lea.hbm %s319_s6, 16 }
 0x1e1   :  { %p149_p5 = scmp.ne.s32.totalorder %s319_s6, %s148_s18  ;;  %p152_p6 = scmp.lt.u32.totalorder %s148_s18, %s319_s6 }
 0x1e3   :  { %p154_p7 = pnand %p152_p6, %p149_p5 }
 0x1e5   :  { %157 = shalt.err (!%p154_p7)
}
 0x1e6   :  { %107 = dma.vmem_to_hbm [thread:$0]  %s105_s14, 16, %s319_s6, [#allocation7]  }
 0x1e7   :  { %s208_s25 = smov [#allocation8]  }
 0x1e8   :  { %s114_s26 = sshll.u32 %s208_s25, 4  ;;  %s115_s26 = int_to_ptr.vmem [resolvable:$true] %s114_s26 }
 0x1e9   :  { %s158_s27 = scalar_lea.vmem %s115_s26, 16  ;;  %s162_s28 = scalar_lea.vmem %s115_s26, 32 }
 0x1ea   :  { %p159_p8 = scmp.ne.s32.totalorder %s115_s26, %s158_s27  ;;  %p163_p9 = scmp.lt.s32.totalorder %s115_s26, %s115_s26 }
 0x1eb   :  { %p164_p10 = scmp.lt.s32.totalorder %s162_s28, %s158_s27 }
 0x1ed   :  { %p165_p11 = por %p164_p10, %p163_p9 }
 0x1ef   :  { %p166_p12 = pnand %p165_p11, %p159_p8 }
 0x1f1   :  { %169 = shalt.err (!%p166_p12)
}
 0x1f2   :  { %s170_s8 = scalar_lea.hbm %s320_s7, 16 }
 0x1f3   :  { %p171_p13 = scmp.ne.s32.totalorder %s320_s7, %s170_s8  ;;  %p174_p0 = scmp.lt.u32.totalorder %s170_s8, %s320_s7 }
 0x1f5   :  { %p176_p1 = pnand %p174_p0, %p171_p13 }
 0x1f7   :  { %179 = shalt.err (!%p176_p1)
}
 0x1f8   :  { %117 = dma.vmem_to_hbm [thread:$0]  %s115_s26, 16, %s320_s7, [#allocation7]   ;;  %vm86_vm5 = vcmask 0  }
 0x1f9   :  { %s209_s11 = smov [#allocation4]  }
 0x1fa   :  { %s94_s12 = sshll.u32 %s209_s11, 4  ;;  %s95_s12 = int_to_ptr.vmem [resolvable:$true] %s94_s12 }
 0x1fb   :  { %s180_s13 = scalar_lea.vmem %s95_s12, 16  ;;  %s184_s3 = scalar_lea.vmem %s95_s12, 32 }
 0x1fc   :  { %p181_p2 = scmp.ne.s32.totalorder %s95_s12, %s180_s13  ;;  %p185_p3 = scmp.lt.s32.totalorder %s95_s12, %s95_s12 }
 0x1fd   :  { %p186_p4 = scmp.lt.s32.totalorder %s184_s3, %s180_s13 }
 0x1ff   :  { %p187_p5 = por %p186_p4, %p185_p3 }
 0x201   :  { %p188_p6 = pnand %p187_p5, %p181_p2 }
 0x26b   :  { %v85_v43 = vpop.xlane.xlu1 %84 }
 0x26c   :  { %87 = vst.msk [vmem:[#allocation4] sm:$0x1] %vm86_vm5, %v85_v43 }
 0x26d   :  { %191 = shalt.err (!%p188_p6)
}
 0x26e   :  { %s192_s16 = scalar_lea.hbm %s318_s5, 16 }
 0x26f   :  { %p193_p7 = scmp.ne.s32.totalorder %s318_s5, %s192_s16  ;;  %p196_p8 = scmp.lt.u32.totalorder %s192_s16, %s318_s5 }
 0x271   :  { %p198_p9 = pnand %p196_p8, %p193_p7 }
 0x273   :  { %201 = shalt.err (!%p198_p9)
}
 0x274   :  { %97 = dma.vmem_to_hbm [thread:$0]  %s95_s12, 16, %s318_s5, [#allocation5]  }
 0x275   :  { %202 = dma.done.wait [#allocation5], 16  }
 0x276   :  { %203 = vsyncadd [#allocation5], 4294967280 }
 0x277   :  { %204 = dma.done.wait [#allocation7], 32  }
 0x278   :  { %205 = vsyncadd [#allocation7], 4294967264 }
 0x279   :  { %127 = vsyncpa [#allocation5], 1 }
 0x27a   :  { %128 = vsyncpa [#allocation7], 1 }

</bundles_post_ra>
